<compile_context>
chip_gen: v6e
topology: v6e:2x2x1
jax: 0.10.0
libtpu: 0.0.40
codegen_flags: <defaults>
</compile_context>

<pallas_src>
import jax
import jax.numpy as jnp
from jax.experimental import pallas as pl
from jax.experimental.pallas import tpu as pltpu

BN_EPS = 1e-5
LANES = 128


def _round_up(x, m):
    return ((x + m - 1) // m) * m


def _pad2(r, c, itemsize=4):
    """Approx VMEM footprint of a 2-D (r, c) f32 tile with (8, 128) layout padding."""
    return _round_up(r, 8) * _round_up(c, LANES) * itemsize


def _vmem_caps():
    phys = 64 << 20  # conservative default: v7x per-TensorCore VMEM
    try:
        info = pltpu.get_tpu_info()
        phys = int(getattr(info, "vmem_capacity_bytes", phys))
    except Exception:
        pass
    # Scoped-limit cap ~75% of physical: 48 MiB on v7x, 96 MiB on v5e/v6e.
    return phys, (phys * 3) // 4


# --------------------------------------------------------------------------- #
# Kernels
# --------------------------------------------------------------------------- #
def _fullhw_kernel(x_ref, w1_ref, b1_ref, w2_ref, b2_ref, o_ref):
    """Fast path: per-batch block holds the full (C, HW) slab; one grid step per batch."""
    x = x_ref[...].astype(jnp.float32)                          # (1, C, HW)
    pooled = jnp.max(x, axis=-1)                                # (1, C)
    y1 = jnp.dot(pooled, w1_ref[...], preferred_element_type=jnp.float32)
    y1 = jnp.maximum(y1 + b1_ref[...], 0.0)
    y2 = jnp.dot(y1, w2_ref[...], preferred_element_type=jnp.float32)
    y2 = y2 + b2_ref[...]
    o_ref[...] = y2.reshape(o_ref.shape).astype(o_ref.dtype)


def _make_tiled_kernel(hw, t):
    """Streaming path: grid = (N, cdiv(HW, t)); per-batch (1, C) running-max scratch."""
    needs_mask = (hw % t) != 0

    def kernel(x_ref, w1_ref, b1_ref, w2_ref, b2_ref, o_ref, max_ref):
        s = pl.program_id(1)
        n_steps = pl.num_programs(1)

        @pl.when(s == 0)
        def _init():
            max_ref[...] = jnp.full(max_ref.shape, -jnp.inf, dtype=max_ref.dtype)

        x = x_ref[...].astype(jnp.float32)                      # (1, C, t)
        if needs_mask:
            # Tail tile extends past HW -> mask the out-of-range lanes with -inf
            # in-kernel (no wrapper-side padding / extra HBM traffic).
            lane = jax.lax.broadcasted_iota(jnp.int32, x.shape, dimension=2)
            x = jnp.where(s * t + lane < hw, x, -jnp.inf)

        # One cross-lane (XLU) reduce per tile + a single (1, C) VPU maximum.
        max_ref[...] = jnp.maximum(max_ref[...], jnp.max(x, axis=-1))

        @pl.when(s == n_steps - 1)
        def _finalize():
            pooled = max_ref[...]                               # (1, C)
            y1 = jnp.dot(pooled, w1_ref[...], preferred_element_type=jnp.float32)
            y1 = jnp.maximum(y1 + b1_ref[...], 0.0)
            y2 = jnp.dot(y1, w2_ref[...], preferred_element_type=jnp.float32)
            y2 = y2 + b2_ref[...]
            o_ref[...] = y2.reshape(o_ref.shape).astype(o_ref.dtype)

    return kernel


# --------------------------------------------------------------------------- #
# Wrapper
# --------------------------------------------------------------------------- #
def _fold_bn(params):
    """Fold conv bias + BatchNorm (eval) into effective weights / biases."""
    Cr, C = params["w1"].shape
    s1 = params["bn1_gamma"] * jax.lax.rsqrt(params["bn1_var"] + BN_EPS)     # (Cr,)
    w1_eff = (params["w1"] * s1[:, None]).T.astype(jnp.float32)              # (C, Cr)
    b1_eff = ((params["b1"] - params["bn1_mean"]) * s1
              + params["bn1_beta"]).reshape(1, Cr).astype(jnp.float32)       # (1, Cr)
    s2 = params["bn2_gamma"] * jax.lax.rsqrt(params["bn2_var"] + BN_EPS)     # (C,)
    w2_eff = (params["w2"] * s2[:, None]).T.astype(jnp.float32)              # (Cr, C)
    b2_eff = ((params["b2"] - params["bn2_mean"]) * s2
              + params["bn2_beta"]).reshape(1, C).astype(jnp.float32)        # (1, C)
    return w1_eff, b1_eff, w2_eff, b2_eff


def channel_attn(x, params, *, tile_lanes=None, force_tiled=False):
    """x: (N, C, H, W) NCHW (f32 or bf16).  Returns (N, C, 1, 1) like the torch module."""
    N, C, H, W = x.shape
    HW = H * W
    Cr = params["w1"].shape[0]
    itemsize = jnp.dtype(x.dtype).itemsize
    C_pad = _round_up(C, 8)

    w1_eff, b1_eff, w2_eff, b2_eff = _fold_bn(params)
    x_flat = x.reshape(N, C, HW)            # contiguous reshape: no extra HBM traffic

    _, limit_cap = _vmem_caps()

    # Fixed VMEM cost: weights/biases (assume double-buffered) + output block + margin.
    weights_bytes = 2 * (_pad2(C, Cr) + _pad2(1, Cr) + _pad2(Cr, C) + _pad2(1, C))
    out_bytes = 2 * _pad2(1, C)
    margin = 2 << 20

    weight_specs = [
        pl.BlockSpec((C, Cr), lambda *_: (0, 0)),   # w1_eff
        pl.BlockSpec((1, Cr), lambda *_: (0, 0)),   # b1_eff
        pl.BlockSpec((Cr, C), lambda *_: (0, 0)),   # w2_eff
        pl.BlockSpec((1, C), lambda *_: (0, 0)),    # b2_eff
    ]
    # Output kept 3-D (N, 1, C) so the block's last two dims equal the full array dims.
    out_shape = jax.ShapeDtypeStruct((N, 1, C), jnp.float32)

    # ---- fast path: full-HW per-batch block -> one contiguous DMA per batch row ----
    full_block_bytes = 2 * C_pad * _round_up(HW, LANES) * itemsize
    if (not force_tiled and tile_lanes is None
            and full_block_bytes + weights_bytes + out_bytes + margin <= limit_cap):
        vmem_limit = int(min(max(full_block_bytes + weights_bytes + out_bytes
                                 + 2 * margin, 16 << 20), limit_cap))
        out = pl.pallas_call(
            _fullhw_kernel,
            out_shape=out_shape,
            grid_spec=pltpu.PrefetchScalarGridSpec(
                num_scalar_prefetch=0,
                grid=(N,),
                in_specs=[pl.BlockSpec((1, C, HW), lambda b: (b, 0, 0))] + weight_specs,
                out_specs=pl.BlockSpec((1, 1, C), lambda b: (b, 0, 0)),
            ),
            compiler_params=pltpu.CompilerParams(
                dimension_semantics=("parallel",),
                vmem_limit_bytes=vmem_limit,
            ),
        )(x_flat, w1_eff, b1_eff, w2_eff, b2_eff)
        return out.reshape(N, C, 1, 1)

    # ---- tiled streaming path: grid over (batch, HW tiles) ----
    scratch_bytes = _pad2(1, C)
    fixed = weights_bytes + out_bytes + scratch_bytes + margin
    if tile_lanes is None:
        budget = max(limit_cap - fixed, 2 * C_pad * LANES * itemsize)
        t = budget // (2 * C_pad * itemsize)          # double-buffered (1, C, t) tiles
        t = max(LANES, (t // LANES) * LANES)
    else:
        t = max(LANES, (int(tile_lanes) // LANES) * LANES)
    t = min(t, _round_up(HW, LANES))
    n_steps = pl.cdiv(HW, t)

    tile_bytes = 2 * C_pad * t * itemsize
    vmem_limit = int(min(max(tile_bytes + fixed + margin, 16 << 20), limit_cap))

    out = pl.pallas_call(
        _make_tiled_kernel(HW, t),
        out_shape=out_shape,
        grid_spec=pltpu.PrefetchScalarGridSpec(
            num_scalar_prefetch=0,
            grid=(N, n_steps),
            in_specs=[pl.BlockSpec((1, C, t), lambda b, s: (b, 0, s))] + weight_specs,
            out_specs=pl.BlockSpec((1, 1, C), lambda b, s: (b, 0, 0)),
            scratch_shapes=[pltpu.VMEM((1, C), jnp.float32)],
        ),
        compiler_params=pltpu.CompilerParams(
            dimension_semantics=("parallel", "arbitrary"),
            vmem_limit_bytes=vmem_limit,
        ),
    )(x_flat, w1_eff, b1_eff, w2_eff, b2_eff)
    return out.reshape(N, C, 1, 1)


# --------------------------------------------------------------------------- #
# Parameters + pure-JAX reference
# --------------------------------------------------------------------------- #
def make_params(key, in_channels, reduction_rate=4):
    assert in_channels % reduction_rate == 0
    cr = in_channels // reduction_rate
    k1, k2, k3, k4 = jax.random.split(key, 4)
    bound1 = 1.0 / (in_channels ** 0.5)
    bound2 = 1.0 / (cr ** 0.5)
    return {
        "w1": jax.random.uniform(k1, (cr, in_channels), jnp.float32, -bound1, bound1),
        "b1": jax.random.uniform(k2, (cr,), jnp.float32, -bound1, bound1),
        "bn1_gamma": jnp.ones((cr,), jnp.float32),
        "bn1_beta": jnp.zeros((cr,), jnp.float32),
        "bn1_mean": jnp.zeros((cr,), jnp.float32),
        "bn1_var": jnp.ones((cr,), jnp.float32),
        "w2": jax.random.uniform(k3, (in_channels, cr), jnp.float32, -bound2, bound2),
        "b2": jax.random.uniform(k4, (in_channels,), jnp.float32, -bound2, bound2),
        "bn2_gamma": jnp.ones((in_channels,), jnp.float32),
        "bn2_beta": jnp.zeros((in_channels,), jnp.float32),
        "bn2_mean": jnp.zeros((in_channels,), jnp.float32),
        "bn2_var": jnp.ones((in_channels,), jnp.float32),
    }


def channel_attn_ref(x, p):
    """Pure-JAX reference mirroring the torch forward (BN in eval mode)."""
    pooled = jnp.max(x, axis=(2, 3))                                    # (N, C)
    y1 = pooled @ p["w1"].T + p["b1"]
    y1 = (y1 - p["bn1_mean"]) / jnp.sqrt(p["bn1_var"] + BN_EPS)
    y1 = y1 * p["bn1_gamma"] + p["bn1_beta"]
    y1 = jnp.maximum(y1, 0.0)
    y2 = y1 @ p["w2"].T + p["b2"]
    y2 = (y2 - p["bn2_mean"]) / jnp.sqrt(p["bn2_var"] + BN_EPS)
    y2 = y2 * p["bn2_gamma"] + p["bn2_beta"]
    return y2.reshape(*y2.shape, 1, 1)


if __name__ == "__main__":
    key = jax.random.PRNGKey(0)
    kx, kp, kx2 = jax.random.split(key, 3)

    N, C, H, W = 2, 4, 16, 16            # in_channels=4, reduction_rate=4 -> Cr=1
    x = jax.random.normal(kx, (N, C, H, W), jnp.float32)
    params = make_params(kp, in_channels=C, reduction_rate=4)
    ref = channel_attn_ref(x, params)

    # 1) Auto path: fits VMEM -> full-HW per-batch contiguous block, grid=(N,) parallel.
    out_fast = jax.block_until_ready(channel_attn(x, params))
    assert out_fast.shape == (N, C, 1, 1)
    assert jnp.allclose(out_fast, ref, atol=1e-5, rtol=1e-5), (out_fast, ref)

    # 2) Tiled streaming path, HW (=256) divisible by the tile -> 2 reduction steps
    #    per batch row, exercising the (1, C) running-max scratch + init/finalize.
    out_tiled = jax.block_until_ready(
        channel_attn(x, params, tile_lanes=128, force_tiled=True))
    assert jnp.allclose(out_tiled, ref, atol=1e-5, rtol=1e-5), (out_tiled, ref)

    # 3) Tiled path with a ragged tail (HW=169, not a multiple of 128) to exercise
    #    the in-kernel tail masking (no wrapper-side -inf padding anymore).
    H2 = W2 = 13
    x2 = jax.random.normal(kx2, (N, C, H2, W2), jnp.float32)
    ref2 = channel_attn_ref(x2, params)
    out2 = jax.block_until_ready(
        channel_attn(x2, params, tile_lanes=128, force_tiled=True))
    assert jnp.allclose(out2, ref2, atol=1e-5, rtol=1e-5), (out2, ref2)

    print("KERNEL_OK")
</pallas_src>

<mosaic_0001>
module attributes {stable_mosaic.version = 11 : i64} {
  func.func @_fullhw_kernel(%arg0: i32, %arg1: memref<1x4x256xf32, #tpu.memory_space<vmem>>, %arg2: memref<4x1xf32, #tpu.memory_space<vmem>>, %arg3: memref<1x1xf32, #tpu.memory_space<vmem>>, %arg4: memref<1x4xf32, #tpu.memory_space<vmem>>, %arg5: memref<1x4xf32, #tpu.memory_space<vmem>>, %arg6: memref<1x1x4xf32, #tpu.memory_space<vmem>>) attributes {dimension_semantics = [#tpu.dimension_semantics<parallel>], iteration_bounds = array<i64: 2>, scalar_prefetch = 0 : i64, scratch_operands = 0 : i64, tpu.core_type = #tpu.core_type<tc>, window_params = [{transform_indices = @transform_0, window_bounds = array<i64: 1, 4, 256>}, {pipeline_mode = #tpu.pipeline_mode<synchronous>, transform_indices = @transform_1, window_bounds = array<i64: 4, 1>}, {pipeline_mode = #tpu.pipeline_mode<synchronous>, transform_indices = @transform_2, window_bounds = array<i64: 1, 1>}, {pipeline_mode = #tpu.pipeline_mode<synchronous>, transform_indices = @transform_3, window_bounds = array<i64: 1, 4>}, {pipeline_mode = #tpu.pipeline_mode<synchronous>, transform_indices = @transform_4, window_bounds = array<i64: 1, 4>}, {transform_indices = @transform_5, window_bounds = array<i64: 1, 1, 4>}]} {
    %c0 = arith.constant 0 : index
    %c0_0 = arith.constant 0 : index
    %c0_1 = arith.constant 0 : index
    %0 = vector.load %arg1[%c0, %c0_0, %c0_1] : memref<1x4x256xf32, #tpu.memory_space<vmem>>, vector<1x4x256xf32>
    %cst = arith.constant dense<0xFF800000> : vector<1x4xf32>
    %1 = vector.multi_reduction <maximumf>, %0, %cst [2] : vector<1x4x256xf32> to vector<1x4xf32>
    %c0_2 = arith.constant 0 : index
    %c0_3 = arith.constant 0 : index
    %2 = vector.load %arg2[%c0_2, %c0_3] : memref<4x1xf32, #tpu.memory_space<vmem>>, vector<4x1xf32>
    %cst_4 = arith.constant dense<0.000000e+00> : vector<1x1xf32>
    %3 = tpu.matmul %1, %2, %cst_4 {dimension_numbers = #tpu.dot_dimension_numbers<[1], [0], [0], [1], [0, 0, 1, 1], [], []>} : vector<1x4xf32>, vector<4x1xf32>, vector<1x1xf32> -> vector<1x1xf32>
    %c0_5 = arith.constant 0 : index
    %c0_6 = arith.constant 0 : index
    %4 = vector.load %arg3[%c0_5, %c0_6] : memref<1x1xf32, #tpu.memory_space<vmem>>, vector<1x1xf32>
    %5 = arith.addf %3, %4 : vector<1x1xf32>
    %cst_7 = arith.constant 0.000000e+00 : f32
    %6 = vector.broadcast %cst_7 : f32 to vector<1x1xf32>
    %7 = arith.maximumf %5, %6 : vector<1x1xf32>
    %c0_8 = arith.constant 0 : index
    %c0_9 = arith.constant 0 : index
    %8 = vector.load %arg4[%c0_8, %c0_9] : memref<1x4xf32, #tpu.memory_space<vmem>>, vector<1x4xf32>
    %cst_10 = arith.constant dense<0.000000e+00> : vector<1x4xf32>
    %9 = tpu.matmul %7, %8, %cst_10 {dimension_numbers = #tpu.dot_dimension_numbers<[1], [0], [0], [1], [0, 0, 1, 1], [], []>} : vector<1x1xf32>, vector<1x4xf32>, vector<1x4xf32> -> vector<1x4xf32>
    %c0_11 = arith.constant 0 : index
    %c0_12 = arith.constant 0 : index
    %10 = vector.load %arg5[%c0_11, %c0_12] : memref<1x4xf32, #tpu.memory_space<vmem>>, vector<1x4xf32>
    %11 = arith.addf %9, %10 : vector<1x4xf32>
    %12 = vector.shape_cast %11 : vector<1x4xf32> to vector<1x1x4xf32>
    %c0_13 = arith.constant 0 : index
    %c0_14 = arith.constant 0 : index
    %c0_15 = arith.constant 0 : index
    %13 = vector.load %arg6[%c0_13, %c0_14, %c0_15] : memref<1x1x4xf32, #tpu.memory_space<vmem>>, vector<1x1x4xf32>
    tpu.vector_store %arg6[%c0_13, %c0_14, %c0_15], %12 {strides = array<i32>} : memref<1x1x4xf32, #tpu.memory_space<vmem>>, vector<1x1x4xf32>,
    return
  }
  func.func @transform_0(%arg0: i32) -> (i32, i32, i32) {
    %c0_i32 = arith.constant 0 : i32
    %c0_i32_0 = arith.constant 0 : i32
    %c0_i32_1 = arith.constant 0 : i32
    return %arg0, %c0_i32, %c0_i32_0 : i32, i32, i32
  }
  func.func @transform_1(%arg0: i32) -> (i32, i32) {
    %c0_i32 = arith.constant 0 : i32
    %c0_i32_0 = arith.constant 0 : i32
    %c0_i32_1 = arith.constant 0 : i32
    return %c0_i32, %c0_i32_0 : i32, i32
  }
  func.func @transform_2(%arg0: i32) -> (i32, i32) {
    %c0_i32 = arith.constant 0 : i32
    %c0_i32_0 = arith.constant 0 : i32
    %c0_i32_1 = arith.constant 0 : i32
    return %c0_i32, %c0_i32_0 : i32, i32
  }
  func.func @transform_3(%arg0: i32) -> (i32, i32) {
    %c0_i32 = arith.constant 0 : i32
    %c0_i32_0 = arith.constant 0 : i32
    %c0_i32_1 = arith.constant 0 : i32
    return %c0_i32, %c0_i32_0 : i32, i32
  }
  func.func @transform_4(%arg0: i32) -> (i32, i32) {
    %c0_i32 = arith.constant 0 : i32
    %c0_i32_0 = arith.constant 0 : i32
    %c0_i32_1 = arith.constant 0 : i32
    return %c0_i32, %c0_i32_0 : i32, i32
  }
  func.func @transform_5(%arg0: i32) -> (i32, i32, i32) {
    %c0_i32 = arith.constant 0 : i32
    %c0_i32_0 = arith.constant 0 : i32
    %c0_i32_1 = arith.constant 0 : i32
    return %arg0, %c0_i32, %c0_i32_0 : i32, i32, i32
  }
}

</mosaic_0001>

<bundles_post_ra>
// kernel: tpu_custom_call.1
= control target key start
LH: loop header
LB: loop body
LE: loop exit
PB: predicated region body
PF: predicated region fallthrough
CT: control target
= control target key end

     0   :  { %s866_s0 = inlined_call_operand.hbm [shape: f32[2,4,256], index: 0, kind: input, shape index: {}]   ;;  %s867_s1 = inlined_call_operand.vmem [shape: f32[4,1], index: 1, kind: input, shape index: {}]   ;;  %s868_s2 = inlined_call_operand.<no memory space> [shape: f32[1,1], index: 2, kind: input, shape index: {}]   ;;  %s869_s3 = inlined_call_operand.vmem [shape: f32[1,4], index: 3, kind: input, shape index: {}]   ;;  %s870_s4 = inlined_call_operand.vmem [shape: f32[1,4], index: 4, kind: input, shape index: {}]   ;;  %s871_s5 = inlined_call_operand.hbm [shape: f32[2,1,4], index: 5, kind: output, shape index: {}]  }
   0x1   :  { %v10_v0 = vstv %s868_s2 }
   0x2   :  { %11 = vst [vmem:[#allocation2] sm:$0x1] %v10_v0 }
   0x3   :  { %12 = vsyncpa [#allocation4], 0 }
   0x4   :  { %14 = vsyncpa [#allocation4 + $0x1], 0 }
   0x5   :  { %15 = vsyncpa [#allocation5], 0 }
   0x6   :  { %17 = vsyncpa [#allocation5 + $0x1], 0  ;;  %s709_s20 = smov 0   ;;  %s711_s21 = smov 0  }
   0x7   :  { %s713_s22 = smov 0   ;;  %s715_s23 = smov 0  }
   0x8 LB: > { %s730_s2 = sadd.s32 4294967295, %s670_s23   ;;  %s499_s24 = sadd.s32 4294967294, %s670_s23   ;;  %s670_s23 = sphi %s715_s23, %s888_s23   ;;  %s666_s22 = sphi %s713_s22, %s887_s22   ;;  %s662_s21 = sphi %s711_s21, %s886_s21   ;;  %s658_s20 = sphi %s709_s20, %s885_s20  }
   0x9   : > { %s734_s25 = sadd.s32 1, %s670_s23   ;;  %s30_s26 = sadd.s32 1, %s666_s22 }
   0xa   : > { %s27_s27 = ssub.s32 %s670_s23, %s734_s25  ;;  %p37_p0 = scmp.ne.s32.totalorder %s666_s22, %s662_s21 }
   0xb   : > { %p28_p1 = scmp.eq.s32.totalorder %s27_s27, 0  ;;  %p38_p2 = scmp.eq.s32.totalorder %s670_s23, 0 }
   0xc   : > { %p43_p3 = scmp.ne.s32.totalorder %s662_s21, %s658_s20  ;;  %p44_p4 = scmp.eq.s32.totalorder %s730_s2, 0 }
   0xd   : > { %s746_s28 = scalar_select %p28_p1, %s666_s22, %s30_s26  }
   0xe   : > { %p748_p5 = por %p38_p2, %p37_p0  ;;  %p752_p6 = por %p44_p4, %p43_p3 }
   0xf   : > { %p151_p7 = scmp.eq.s32.totalorder %s730_s2, 1  ;;  %p157_p8 = scmp.eq.s32.totalorder %s499_s24, 1 }
  0x10   : > { %s875_s30 = scalar_select %p752_p6, 1, 0 }
  0x11   : > { %p541_p10 = scmp.lt.s32.totalorder %s670_s23, 2  ;;  %p759_p11 = por %p151_p7, %p37_p0 }
  0x12   : > { %p763_p12 = por %p157_p8, %p43_p3  ;;  %s189_s8 = sand.u32 1, %s666_s22  }
  0x13   : > { %s876_s6 = scalar_select %p759_p11, 1, 0 }
  0x14   : > { %s877_s7 = scalar_select %p763_p12, 1, 0 }
  0x15   : > { %s514_s9 = sshll.u32 %s670_s23, 7  ;;  %s502_s10 = sshll.u32 %s189_s8, 3 }
  0x16   : > { %s772_s13 = scalar_lea.hbm %s866_s0, %s514_s9  ;;  %s193_s14 = scalar_lea.vmem [#allocation3], %s502_s10 }
  0x17   : > { %s201_s15 = sshll.u32 %s193_s14, 4  ;;  %p776_p13 = pnand %p541_p10, %p748_p5  ;;  %s780_s15 = int_to_ptr.vmem [resolvable:$true] %s201_s15 }
  0x18   : > { %s190_s17 = scalar_lea.sflag [#allocation4], %s189_s8  ;;  %s578_s18 = scalar_lea.hbm %s772_s13, 128 }
  0x19   : > { %p579_p2 = scmp.ne.s32.totalorder %s772_s13, %s578_s18  ;;  %p580_p3 = pneg %p776_p13 }
  0x1a   : > { %s583_s26 = scalar_lea.hbm %s866_s0, 256  ;;  %p584_p5 = scmp.lt.s32.totalorder %s772_s13, %s866_s0 }
  0x1b   : > { %p581_p4 = pnand %p580_p3, %p579_p2  ;;  %p585_p8 = scmp.lt.s32.totalorder %s583_s26, %s578_s18 }
  0x1d   : > { %p582_p7 = pneg %p581_p4  ;;  %p586_p10 = por %p585_p8, %p584_p5 }
  0x1f   : > { %p587_p9 = pnand %p586_p10, %p582_p7 }
  0x21   : > { %590 = shalt.err (!%p587_p9)
}
  0x22   : > { %s591_s8 = scalar_lea.vmem %s780_s15, 128  ;;  %s672_s9 = smov [#allocation3]  }
  0x23   : > { %p592_p0 = scmp.ne.s32.totalorder %s780_s15, %s591_s8  ;;  %s596_s10 = sshll.u32 %s672_s9, 4  ;;  %s597_s10 = int_to_ptr.vmem [resolvable:$false] %s596_s10 }
  0x24   : > { %s598_s11 = scalar_lea.vmem %s597_s10, 256  ;;  %p599_p4 = scmp.lt.s32.totalorder %s780_s15, %s597_s10 }
  0x25   : > { %p594_p1 = pnand %p592_p0, %p580_p3  ;;  %p600_p12 = scmp.lt.s32.totalorder %s598_s11, %s591_s8 }
  0x27   : > { %p595_p2 = pneg %p594_p1  ;;  %p601_p11 = por %p600_p12, %p599_p4 }
  0x29   : > { %p602_p6 = pnand %p601_p11, %p595_p2 }
  0x2b   : > { %605 = shalt.err (!%p602_p6)
}
  0x2c   : > { %536 = dma.hbm_to_vmem [thread:$0]  (!%p776_p13), %s772_s13, 128, %s780_s15, %s190_s17  }
  0x2d   : > { %p879_p9 = scmp.lt.s32.totalorder %s670_s23, 3  ;;  %p880_p7 = scmp.ge.s32.totalorder %s670_s23, 1 }
  0x2f   : > { %p207_p0 = pnand %p880_p7, %p879_p9 }
  0x30   : > { %s807_s12 = sand.u32 (!%p207_p0), 1, %s662_s21   ;;  %p881_p6 = scmp.ne.s32.totalorder (!%p207_p0), %s875_s30, 0 }
  0x31   : > { %210 = sbr.rel (%p207_p0) target bundleno = 606 (0x25e), region = 40  ;;  %s506_s14 = sshll.u32 (!%p207_p0), %s807_s12, 3 }
  0x32   : > { %s213_s18 = scalar_lea.sflag (!%p207_p0), [#allocation4], %s807_s12  ;;  %s216_s19 = scalar_lea.vmem (!%p207_p0), [#allocation3], %s506_s14 }
  0x36   : > { %649 = dma.done.wait (%p881_p6), %s213_s18, 128  }
  0x37   : > { %651 = vsyncadd (%p881_p6), %s213_s18, 4294967168  ;;  %vm246_vm0 = vcmask 1043456   ;;  %v242_v1 = vld [vmem:[%s216_s19] sm:$0xff]  ;;  %v673_v6 = vmov 0.0   ;;  %vm674_vm1 = vmmov 0   ;;  %v255_v8 = vlaneseq  ;;  %s511_s26 = sshll.u32 %s730_s2, 4 }
  0x38   : > { %v244_v2 = vcombine.high %v242_v1, %v242_v1  ;;  %v247_v3 = vsel %vm246_vm0, %v242_v1, -inf  ;;  %519 = vmatprep.subr.mxu0 %v673_v6  ;;  %v252_v7 = vld [vmem:[%s867_s1] sm:$0xf]  ;;  %524 = vmatprep.subr.mxu1 %v673_v6  ;;  %vm261_vm2 = vcmask 31744   ;;  %vm344_vm3 = vcmask 1040384   ;;  %s241_s27 = scalar_lea.vmem [#allocation6], %s807_s12  ;;  %s829_s10 = scalar_lea.hbm %s871_s5, %s511_s26 }
  0x39   : > { %520 = vmatpush3.msk.msra.mxu0 %vm246_vm0, %v252_v7  ;;  %521 = vmatprep.mubr.msk.f32.mxu0 %vm674_vm1, %v673_v6  ;;  %v256_v9 = vand.u32 127, %v255_v8  ;;  %v258_v10 = vshrl.u32 %v255_v8, 7  ;;  %v338_v14 = vld [vmem:[%s869_s3] sm:$0x1]  ;;  %vm340_vm4 = vcmask 7168   ;;  %s433_s29 = sshll.u32 %s241_s27, 4  ;;  %s434_s29 = int_to_ptr.vmem [resolvable:$true] %s433_s29 }
  0x3a   : > { %v248_v4 = vsel %vm246_vm0, %v244_v2, -inf  ;;  %526 = vmatprep.mubr.msk.f32.mxu1 %vm674_vm1, %v673_v6  ;;  %525 = vmatpush3.msk.msra.mxu1 %vm344_vm3, %v338_v14  ;;  %v253_v15 = vld [vmem:[#allocation2] sm:$0x1]  ;;  %vm418_vm5 = vcmask 24576   ;;  %s421_s11 = scalar_lea.sflag [#allocation5], %s807_s12  ;;  %s606_s14 = scalar_lea.vmem %s434_s29, 16 }
  0x3b   : > { %v249_v5 = vmax.f32 %v247_v3, %v248_v4  ;;  %v259_v11 = vsub.s32 %v256_v9, %v258_v10  ;;  %v339_v20 = vld [vmem:[%s870_s4] sm:$0x1]  ;;  %p607_p11 = scmp.ne.s32.totalorder %s434_s29, %s606_s14  ;;  %p882_p12 = scmp.ne.s32.totalorder %s876_s6, 0 }
  0x3c   : > { %s675_s2 = smov [#allocation6]  }
  0x3d   : > { %250 = vmax.xlane.f32.xlu0 %v249_v5  ;;  %p608_p13 = pnand %p607_p11, %p882_p12  ;;  %s610_s18 = sshll.u32 %s675_s2, 4  ;;  %s611_s18 = int_to_ptr.vmem [resolvable:$false] %s610_s18 }
  0x3e   : > { %s612_s19 = scalar_lea.vmem %s611_s18, 32  ;;  %p613_p3 = scmp.lt.s32.totalorder %s434_s29, %s611_s18 }
  0x3f   : > { %p609_p1 = pneg %p608_p13  ;;  %p614_p5 = scmp.lt.s32.totalorder %s612_s19, %s606_s14 }
  0x41   : > { %p615_p8 = por %p614_p5, %p613_p3 }
  0x43   : > { %p616_p10 = pnand %p615_p8, %p609_p1 }
  0xc6   : > { %v251_v12 = vpop.xlane.xlu0 %250 }
  0xc7   : > { %v260_v13 = vrot.slane %v251_v12, %v259_v11 }
  0xc9   : > { %522 = vmatmul.mubr.msk.f32.vlgmr.msra.gmra.mxu0 %vm261_vm2, %v260_v13 }
 0x189   : > { %v333_v16 = vpop.f32.mrf.mxu0 }
 0x18a   : > { %v334_v17 = vadd.f32 %v333_v16, %v253_v15 }
 0x18b   : > { %v523_v18 = vpop.f32.mrf.mxu0 }
 0x18c   : > { %v337_v19 = vmax.f32 %v334_v17, 0.0 }
 0x18e   : > { %527 = vmatmul.mubr.msk.f32.vlgmr.msra.gmra.mxu1 %vm340_vm4, %v337_v19 }
 0x24e   : > { %v414_v21 = vpop.f32.mrf.mxu1 }
 0x24f   : > { %v415_v22 = vadd.f32 %v414_v21, %v339_v20 }
 0x250   : > { %v528_v23 = vpop.f32.mrf.mxu1 }
 0x251   : > { %419 = vst.msk [vmem:[%s241_s27] sm:$0x1] %vm418_vm5, %v415_v22 }
 0x252   : > { %619 = shalt.err (!%p616_p10)
}
 0x253   : > { %s620_s13 = scalar_lea.hbm %s829_s10, 16  ;;  %s624_s30 = scalar_lea.hbm %s871_s5, 32 }
 0x254   : > { %p621_p2 = scmp.ne.s32.totalorder %s829_s10, %s620_s13  ;;  %p625_p7 = scmp.lt.s32.totalorder %s829_s10, %s871_s5 }
 0x255   : > { %p626_p0 = scmp.lt.s32.totalorder %s624_s30, %s620_s13 }
 0x256   : > { %p622_p4 = pnand %p621_p2, %p882_p12 }
 0x257   : > { %p627_p6 = por %p626_p0, %p625_p7 }
 0x258   : > { %p623_p9 = pneg %p622_p4 }
 0x25a   : > { %p628_p11 = pnand %p627_p6, %p623_p9 }
 0x25c   : > { %631 = shalt.err (!%p628_p11)
}
 0x25d   : > { %531 = dma.vmem_to_hbm [thread:$0]  (%p882_p12), %s434_s29, 16, %s829_s10, %s421_s11  }
 0x25e PF: > { %s445_s24 = sand.u32 1, %s658_s20   ;;  %p883_p13 = scmp.ne.s32.totalorder %s877_s7, 0 }
 0x25f   : > { %p884_p1 = scmp.ge.s32.totalorder %s670_s23, 2  ;;  %s446_s26 = scalar_lea.sflag [#allocation5], %s445_s24 }
 0x261   : > { %p538_p3 = pnand %p884_p1, %p883_p13 }
 0x263   : > { %p539_p5 = pneg %p538_p3 }
 0x265   : > { %653 = dma.done.wait (%p539_p5), %s446_s26, 16  }
 0x266   : > { %655 = vsyncadd (%p539_p5), %s446_s26, 4294967280  ;;  %p20_p8 = scmp.ge.s32.totalorder %s734_s25, 4   ;;  %s885_s20 = smov %s662_s21 }
 0x267   : > { %s886_s21 = smov %s666_s22  ;;  %s887_s22 = smov %s746_s28 }
 0x268   : > { %s888_s23 = smov %s734_s25  ;;  %22 = sbr.rel (!%p20_p8) target bundleno = 8 (0x8), region = 85 }
 0x26d   :  { %450 = vsyncpa [#allocation4], 1 }
 0x26e   :  { %452 = vsyncpa [#allocation4 + $0x1], 1 }
 0x26f   :  { %453 = vsyncpa [#allocation5], 1 }
 0x270   :  { %455 = vsyncpa [#allocation5 + $0x1], 1 }

</bundles_post_ra>
